<compile_context>
chip_gen: v6e
topology: v6e:2x2x1
jax: 0.10.0
libtpu: 0.0.40
codegen_flags: <defaults>
</compile_context>

<pallas_src>
import jax
import jax.numpy as jnp
from jax.experimental import pallas as pl
from jax.experimental.pallas import tpu as pltpu

LANES = 128
MAX_BLOCK_ROWS = 4096  # (4096, 128) f32 block = 2 MiB; 2 arrays x 2 buffers = 8 MiB VMEM


def _round_up(a, b):
    return ((a + b - 1) // b) * b


def _pish_kernel(ab_ref, x_ref, o_ref):
    # ab_ref in SMEM: [a1, a3] (precomputed in the wrapper)
    a1 = ab_ref[0]
    a3 = ab_ref[1]

    x = x_ref[...].astype(jnp.float32)          # compute in f32 (v5e-safe)
    ex = jnp.exp(-x)
    denom = jnp.where(x > 0, a1, a3) + ex       # pick denominator BEFORE the reciprocal
    z = pl.reciprocal(denom, approx=True)       # single approximate EUP reciprocal
    o_ref[...] = (x * jnp.tanh(z)).astype(o_ref.dtype)


def pish_forward(x, params):
    """x: any-shape float array (e.g. NCHW); params: (3,) float32 [p1, p2, p3]."""
    orig_shape = x.shape
    out_dtype = x.dtype
    n = x.size

    # Hoist the scalar parameter math out of the kernel (done once, not per grid step).
    p1 = params[0].astype(jnp.float32)
    p2 = params[1].astype(jnp.float32)
    p3 = params[2].astype(jnp.float32)
    a1 = jnp.exp(-p1 * p1 * 4.0)                 # gs_gs(p1, 4, 0, 0)
    a2 = jnp.exp(-p2 * p2 * 4.0) - 1.0           # gs_gs(p2, 4, 0, -1)
    a3 = jnp.exp(-p3 * p3 * 4.0 + a2) + 1.0      # gs_gs(p3, 4, a2, 1)
    ab = jnp.stack([a1, a3])

    # Flatten to a lane-dense (rows, 128) slab with large row blocks.
    flat = x.reshape(-1)
    rows = _round_up(pl.cdiv(n, LANES), 8)
    block_rows = min(MAX_BLOCK_ROWS, rows)
    rows = _round_up(rows, block_rows)
    n_pad = rows * LANES
    if n_pad != n:
        # pish(0) == 0 and the tail is sliced off, so zero padding is safe.
        flat = jnp.pad(flat, (0, n_pad - n))
    x2d = flat.reshape(rows, LANES)

    grid = (rows // block_rows,)

    out2d = pl.pallas_call(
        _pish_kernel,
        out_shape=jax.ShapeDtypeStruct((rows, LANES), out_dtype),
        grid=grid,
        in_specs=[
            pl.BlockSpec(memory_space=pltpu.MemorySpace.SMEM),       # [a1, a3] scalars
            pl.BlockSpec((block_rows, LANES), lambda i: (i, 0)),     # x block
        ],
        out_specs=pl.BlockSpec((block_rows, LANES), lambda i: (i, 0)),
        compiler_params=pltpu.CompilerParams(
            dimension_semantics=("parallel",),
        ),
    )(ab, x2d)

    out = out2d.reshape(-1)
    if n_pad != n:
        out = out[:n]
    return out.reshape(orig_shape)


def pish_ref(x, params):
    """Pure-JAX reference matching the PyTorch module."""
    p1, p2, p3 = params[0], params[1], params[2]
    a1 = jnp.exp(-p1 * p1 * 4.0)
    a2 = jnp.exp(-p2 * p2 * 4.0) - 1.0
    a3 = jnp.exp(-p3 * p3 * 4.0 + a2) + 1.0
    ex = jnp.exp(-x)
    z1 = 1.0 / (a1 + ex)
    z2 = 1.0 / (a3 + ex)
    return x * jnp.tanh(jnp.where(x > 0, z1, z2))


if __name__ == "__main__":
    key = jax.random.PRNGKey(0)
    x = jax.random.normal(key, (2, 4, 16, 16), dtype=jnp.float32)

    # deterministic parameter init, same as the PyTorch module's __init__
    params = jnp.array([0.5, 0.5, 0.5], dtype=jnp.float32)

    out = pish_forward(x, params)
    out = jax.block_until_ready(out)

    ref = pish_ref(x, params)
    assert out.shape == x.shape and out.dtype == x.dtype
    # Tolerance loosened slightly because the kernel uses the approximate
    # hardware reciprocal (EUP vrcp) instead of a full-precision divide.
    assert jnp.allclose(out, ref, atol=5e-3, rtol=5e-3)

    print("KERNEL_OK")
</pallas_src>

<mosaic_0001>
module attributes {stable_mosaic.version = 11 : i64} {
  func.func @_pish_kernel(%arg0: i32, %arg1: memref<2xf32, #tpu.memory_space<smem>>, %arg2: memref<16x128xf32, #tpu.memory_space<vmem>>, %arg3: memref<16x128xf32, #tpu.memory_space<vmem>>) attributes {dimension_semantics = [#tpu.dimension_semantics<parallel>], iteration_bounds = array<i64: 1>, scalar_prefetch = 0 : i64, scratch_operands = 0 : i64, tpu.core_type = #tpu.core_type<tc>, window_params = [{transform_indices = @transform_0, window_bounds = array<i64: 2>}, {transform_indices = @transform_1, window_bounds = array<i64: 16, 128>}, {transform_indices = @transform_2, window_bounds = array<i64: 16, 128>}]} {
    %c0 = arith.constant 0 : index
    %0 = memref.load %arg1[%c0] : memref<2xf32, #tpu.memory_space<smem>>
    %c1 = arith.constant 1 : index
    %1 = memref.load %arg1[%c1] : memref<2xf32, #tpu.memory_space<smem>>
    %c0_0 = arith.constant 0 : index
    %c0_1 = arith.constant 0 : index
    %2 = vector.load %arg2[%c0_0, %c0_1] : memref<16x128xf32, #tpu.memory_space<vmem>>, vector<16x128xf32>
    %cst = arith.constant 0.000000e+00 : f32
    %3 = vector.broadcast %cst : f32 to vector<16x128xf32>
    %4 = arith.subf %3, %2 : vector<16x128xf32>
    %5 = math.exp %4 : vector<16x128xf32>
    %cst_2 = arith.constant 0.000000e+00 : f32
    %6 = vector.broadcast %cst_2 : f32 to vector<16x128xf32>
    %7 = arith.cmpf ogt, %2, %6 : vector<16x128xf32>
    %8 = vector.broadcast %0 : f32 to vector<16x128xf32>
    %9 = vector.broadcast %1 : f32 to vector<16x128xf32>
    %10 = arith.select %7, %8, %9 : vector<16x128xi1>, vector<16x128xf32>
    %11 = arith.addf %10, %5 : vector<16x128xf32>
    %12 = tpu.reciprocal %11 {approx = true} : vector<16x128xf32> -> vector<16x128xf32>
    %13 = math.tanh %12 : vector<16x128xf32>
    %14 = arith.mulf %2, %13 : vector<16x128xf32>
    %c0_3 = arith.constant 0 : index
    %c0_4 = arith.constant 0 : index
    %15 = vector.load %arg3[%c0_3, %c0_4] : memref<16x128xf32, #tpu.memory_space<vmem>>, vector<16x128xf32>
    tpu.vector_store %arg3[%c0_3, %c0_4], %14 {strides = array<i32>} : memref<16x128xf32, #tpu.memory_space<vmem>>, vector<16x128xf32>,
    return
  }
  func.func @transform_0(%arg0: i32) -> i32 {
    %c0_i32 = arith.constant 0 : i32
    %c0_i32_0 = arith.constant 0 : i32
    return %c0_i32 : i32
  }
  func.func @transform_1(%arg0: i32) -> (i32, i32) {
    %c0_i32 = arith.constant 0 : i32
    %c0_i32_0 = arith.constant 0 : i32
    return %arg0, %c0_i32 : i32, i32
  }
  func.func @transform_2(%arg0: i32) -> (i32, i32) {
    %c0_i32 = arith.constant 0 : i32
    %c0_i32_0 = arith.constant 0 : i32
    return %arg0, %c0_i32 : i32, i32
  }
}

</mosaic_0001>

<bundles_post_ra>
// kernel: tpu_custom_call.1
= control target key start
LH: loop header
LB: loop body
LE: loop exit
PB: predicated region body
PF: predicated region fallthrough
CT: control target
= control target key end

     0   :  { %7 = vsyncpa [#allocation5], 0  ;;  %s188_s0 = inlined_call_operand.hbm [shape: f32[2], index: 0, kind: input, shape index: {}]   ;;  %s189_s1 = inlined_call_operand.hbm [shape: f32[16,128], index: 1, kind: input, shape index: {}]   ;;  %s190_s2 = inlined_call_operand.hbm [shape: f32[16,128], index: 2, kind: output, shape index: {}]  }
   0x1   :  { %8 = vsyncpa [#allocation3], 0 }
   0x2   :  { %9 = vsyncpa [#allocation4], 0  ;;  %s153_s9 = smov [#allocation2]   ;;  %s154_s12 = smov [#allocation6]  }
   0x3   :  { %17 = dma.hbm_to_smem %s188_s0, 16, %s153_s9, [#allocation5]  }
   0x4   :  { %s23_s13 = sshll.u32 %s154_s12, 4  ;;  %s24_s13 = int_to_ptr.vmem [resolvable:$true] %s23_s13 }
   0x5   :  { %s115_s14 = scalar_lea.vmem %s24_s13, 256  ;;  %p120_p1 = scmp.lt.s32.totalorder %s24_s13, %s24_s13 }
   0x6   :  { %p116_p0 = scmp.ne.s32.totalorder %s24_s13, %s115_s14  ;;  %p121_p2 = scmp.lt.s32.totalorder %s115_s14, %s115_s14 }
   0x8   :  { %p122_p3 = por %p121_p2, %p120_p1 }
   0xa   :  { %p123_p4 = pnand %p122_p3, %p116_p0 }
   0xc   :  { %126 = shalt.err (!%p123_p4)
}
   0xd   :  { %s155_s15 = smov 128   ;;  %s156_s16 = smov 8  }
   0xe   :  { %29 = dma.hbm_to_vmem [thread:$0]  %s189_s1, 256, %s24_s13, [#allocation3], %s155_s15, %s155_s15, %s156_s16  }
   0xf   :  { %147 = dma.done.wait [#allocation5], 16  }
  0x10   :  { %148 = vsyncadd [#allocation5], 4294967280 }
  0x11   :  { %149 = dma.done.wait [#allocation3], 256  }
  0x12   :  { %150 = vsyncadd [#allocation3], 4294967040 }
  0x13   :  { %36 = sfence }
  0x14   :  { %v39_v0 = vld [vmem:[#allocation6] sm:$0xff]  ;;  %v40_v1 = vld [vmem:[#allocation6 + $0x8] sm:$0xff]  ;;  %s37_s0 = sld [smem:[#allocation2]]  ;;  %s157_s1 = smov [#allocation7]  }
  0x15   :  { %v41_v2 = vsub.f32 0.0, %v39_v0  ;;  %v42_v3 = vsub.f32 0.0, %v40_v1  ;;  %s81_s19 = sld [smem:[#allocation2 + $0x1]]  ;;  %vm47_vm0 = vcmp.gt.f32.partialorder %v39_v0, 0.0  ;;  %vm48_vm1 = vcmp.gt.f32.partialorder %v40_v1, 0.0  ;;  %s68_s20 = sshll.u32 %s157_s1, 4  ;;  %s69_s20 = int_to_ptr.vmem [resolvable:$true] %s68_s20 }
  0x16   :  { %s127_s21 = scalar_lea.vmem %s69_s20, 256  ;;  %p132_p6 = scmp.lt.s32.totalorder %s69_s20, %s69_s20 }
  0x17   :  { %v43_v4 = vmul.f32 1.442695, %v41_v2  ;;  %v45_v5 = vmul.f32 1.442695, %v42_v3  ;;  %p128_p5 = scmp.ne.s32.totalorder %s69_s20, %s127_s21  ;;  %p133_p7 = scmp.lt.s32.totalorder %s127_s21, %s127_s21 }
  0x19   :  { %87 = vpow2.f32 %v43_v4  ;;  %p134_p8 = por %p133_p7, %p132_p6 }
  0x1a   :  { %89 = vpow2.f32 %v45_v5  ;;  %v49_v6 = vstv %s37_s0 }
  0x1b   :  { %v50_v7 = vstv %s81_s19  ;;  %p135_p9 = pnand %p134_p8, %p128_p5 }
  0x1c   :  { %v51_v8 = vsel %vm47_vm0, %v49_v6, %v50_v7  ;;  %v52_v9 = vsel %vm48_vm1, %v49_v6, %v50_v7 }
  0x26   :  { %v88_v10 = vpop.eup %87 }
  0x27   :  { %v90_v11 = vpop.eup %89  ;;  %v53_v12 = vadd.f32 %v88_v10, %v51_v8 }
  0x28   :  { %v54_v13 = vadd.f32 %v90_v11, %v52_v9 }
  0x29   :  { %91 = vrcp.f32 %v53_v12 }
  0x2a   :  { %93 = vrcp.f32 %v54_v13 }
  0x36   :  { %v92_v14 = vpop.eup %91 }
  0x37   :  { %v94_v15 = vpop.eup %93  ;;  %95 = vtanh.f32 %v92_v14 }
  0x38   :  { %97 = vtanh.f32 %v94_v15 }
  0x44   :  { %v96_v16 = vpop.eup %95 }
  0x45   :  { %v98_v17 = vpop.eup %97  ;;  %v59_v18 = vmul.f32 %v96_v16, %v39_v0 }
  0x46   :  { %v60_v19 = vmul.f32 %v98_v17, %v40_v1 }
  0x47   :  { %61 = vst [vmem:[#allocation7] sm:$0xff] %v59_v18 }
  0x48   :  { %62 = vst [vmem:[#allocation7 + $0x8] sm:$0xff] %v60_v19 }
  0x49   :  { %138 = shalt.err (!%p135_p9)
}
  0x4a   :  { %74 = dma.vmem_to_hbm [thread:$0]  %s69_s20, 256, %s190_s2, [#allocation4], %s155_s15, %s155_s15, %s156_s16  }
  0x4b   :  { %151 = dma.done.wait [#allocation4], 256  }
  0x4c   :  { %152 = vsyncadd [#allocation4], 4294967040 }
  0x4d   :  { %78 = vsyncpa [#allocation3], 1 }
  0x4e   :  { %79 = vsyncpa [#allocation4], 1 }
  0x4f   :  { %80 = vsyncpa [#allocation5], 1 }

</bundles_post_ra>
